<compile_context>
chip_gen: v7x
topology: tpu7x:2x2x1
jax: 0.10.0
libtpu: 0.0.40
codegen_flags: <defaults>
</compile_context>

<pallas_src>
import functools

import jax
import jax.numpy as jnp
from jax.experimental import pallas as pl
from jax.experimental.pallas import tpu as pltpu

MAX_LENGTH = 64        # max_length in the original module
NUM_CLS = 10           # cls_num in the original module
HIDDEN = 128
DEFAULT_TILE_B = 2048  # works on all generations; >=2 tiles on v7x for big B


def _round_up(x, m):
    return ((x + m - 1) // m) * m


def _mlp_kernel(x_ref, w1_ref, b1_ref, w2_ref, b2_ref, w3_ref, b3_ref, o_ref):
    # In-kernel bf16 cast of the fp32 activations (no separate XLA pad/cast
    # pass over x).  All matmuls: bf16 operands, fp32 MXU accumulation.
    x = x_ref[...].astype(jnp.bfloat16)

    # Layer 1: Linear + ReLU (bias add / ReLU in fp32).
    h1 = jnp.dot(x, w1_ref[...], preferred_element_type=jnp.float32)
    h1 = jnp.maximum(h1 + b1_ref[...], 0.0)
    # TODO(synk): dropout(p=0.2) is eval-mode identity here.

    # Layer 2: Linear + ReLU.
    h2 = jnp.dot(h1.astype(jnp.bfloat16), w2_ref[...],
                 preferred_element_type=jnp.float32)
    h2 = jnp.maximum(h2 + b2_ref[...], 0.0)

    # Layer 3: Linear (logits), unpadded NUM_CLS-wide output.
    out = jnp.dot(h2.astype(jnp.bfloat16), w3_ref[...],
                  preferred_element_type=jnp.float32)
    o_ref[...] = (out + b3_ref[...]).astype(o_ref.dtype)


@functools.partial(jax.jit, static_argnames=("tile_b",))
def nnv2_forward(x, kernel_params, *, tile_b=DEFAULT_TILE_B):
    """x: [B, MAX_LENGTH] float32 -> logits [B, NUM_CLS] float32.

    kernel_params: output of prepare_params() (bf16 weights, fp32 biases).
    """
    w1, b1, w2, b2, w3, b3 = kernel_params
    B = x.shape[0]

    # Batch tile: sublane-granular (8), no larger than needed / requested.
    tb = min(tile_b, _round_up(max(B, 1), 8))
    grid_steps = pl.cdiv(B, tb)
    grid = (grid_steps,)

    flops = 2 * B * (MAX_LENGTH * HIDDEN + HIDDEN * HIDDEN + HIDDEN * NUM_CLS)
    bytes_accessed = (
        B * MAX_LENGTH * 4                          # fp32 x in
        + (w1.size + w2.size + w3.size) * 2         # bf16 weights
        + (b1.size + b2.size + b3.size) * 4         # fp32 biases
        + B * NUM_CLS * 4                           # fp32 logits out
    )

    # Deeper buffering only pays off when the pipeline actually has depth.
    if grid_steps >= 3:
        x_spec = pl.BlockSpec((tb, MAX_LENGTH), lambda i: (i, 0),
                              pipeline_mode=pl.Buffered(3))
        out_spec = pl.BlockSpec((tb, NUM_CLS), lambda i: (i, 0),
                                pipeline_mode=pl.Buffered(3))
    else:
        x_spec = pl.BlockSpec((tb, MAX_LENGTH), lambda i: (i, 0))
        out_spec = pl.BlockSpec((tb, NUM_CLS), lambda i: (i, 0))

    return pl.pallas_call(
        _mlp_kernel,
        out_shape=jax.ShapeDtypeStruct((B, NUM_CLS), jnp.float32),
        grid_spec=pltpu.PrefetchScalarGridSpec(
            num_scalar_prefetch=0,
            grid=grid,
            in_specs=[
                # x: tiled over batch rows (pipelined by Pallas).
                x_spec,
                # Weights / biases: constant index_map -> VMEM-resident,
                # DMAed once, not per tile.
                pl.BlockSpec((MAX_LENGTH, HIDDEN), lambda i: (0, 0)),
                pl.BlockSpec((1, HIDDEN), lambda i: (0, 0)),
                pl.BlockSpec((HIDDEN, HIDDEN), lambda i: (0, 0)),
                pl.BlockSpec((1, HIDDEN), lambda i: (0, 0)),
                pl.BlockSpec((HIDDEN, NUM_CLS), lambda i: (0, 0)),
                pl.BlockSpec((1, NUM_CLS), lambda i: (0, 0)),
            ],
            out_specs=out_spec,
        ),
        compiler_params=pltpu.CompilerParams(
            # Independent batch tiles -> shard across TensorCores (v7x).
            dimension_semantics=("parallel",),
            # Ample for tiles up to ~8192 rows; within every gen's physical VMEM.
            vmem_limit_bytes=32 * 1024 * 1024,
        ),
        cost_estimate=pl.CostEstimate(
            flops=flops, transcendentals=0, bytes_accessed=bytes_accessed),
    )(x, w1, b1, w2, b2, w3, b3)


def init_params(key):
    """Deterministic PyTorch-style init: U(-1/sqrt(fan_in), 1/sqrt(fan_in))."""
    def linear(key, fan_in, fan_out):
        kw, kb = jax.random.split(key)
        bound = 1.0 / jnp.sqrt(fan_in)
        # stored as [in, out] (transposed w.r.t. torch's [out, in])
        w = jax.random.uniform(kw, (fan_in, fan_out), jnp.float32, -bound, bound)
        b = jax.random.uniform(kb, (1, fan_out), jnp.float32, -bound, bound)
        return w, b

    k1, k2, k3 = jax.random.split(key, 3)
    w1, b1 = linear(k1, MAX_LENGTH, HIDDEN)
    w2, b2 = linear(k2, HIDDEN, HIDDEN)
    w3, b3 = linear(k3, HIDDEN, NUM_CLS)
    return (w1, b1, w2, b2, w3, b3)


def prepare_params(params):
    """One-time prep: bf16 MXU weights, fp32 biases (hoisted out of forward)."""
    w1, b1, w2, b2, w3, b3 = params
    return (w1.astype(jnp.bfloat16), b1.astype(jnp.float32),
            w2.astype(jnp.bfloat16), b2.astype(jnp.float32),
            w3.astype(jnp.bfloat16), b3.astype(jnp.float32))


def nnv2_reference(x, params):
    """Pure-JAX reference with the same bf16-operand / fp32-accumulate flow."""
    w1, b1, w2, b2, w3, b3 = params
    f32 = jnp.float32
    bf = jnp.bfloat16
    h = jnp.dot(x.astype(bf), w1.astype(bf), preferred_element_type=f32)
    h = jnp.maximum(h + b1, 0.0)
    h = jnp.dot(h.astype(bf), w2.astype(bf), preferred_element_type=f32)
    h = jnp.maximum(h + b2, 0.0)
    out = jnp.dot(h.astype(bf), w3.astype(bf), preferred_element_type=f32)
    return out + b3


if __name__ == "__main__":
    key = jax.random.PRNGKey(0)
    kx, kp = jax.random.split(key)

    B = 8
    x = jax.random.normal(kx, (B, MAX_LENGTH), jnp.float32)
    params = init_params(kp)
    kernel_params = prepare_params(params)

    out = nnv2_forward(x, kernel_params)
    out = jax.block_until_ready(out)

    ref = nnv2_reference(x, params)
    assert out.shape == (B, NUM_CLS), out.shape
    assert jnp.allclose(out, ref, atol=1e-2, rtol=1e-2), "mismatch vs reference"

    print("KERNEL_OK")
</pallas_src>

<mosaic_0001>
module attributes {stable_mosaic.version = 11 : i64} {
  func.func @_mlp_kernel(%arg0: i32, %arg1: memref<8x64xf32, #tpu.memory_space<vmem>>, %arg2: memref<64x128xbf16, #tpu.memory_space<vmem>>, %arg3: memref<1x128xf32, #tpu.memory_space<vmem>>, %arg4: memref<128x128xbf16, #tpu.memory_space<vmem>>, %arg5: memref<1x128xf32, #tpu.memory_space<vmem>>, %arg6: memref<128x10xbf16, #tpu.memory_space<vmem>>, %arg7: memref<1x10xf32, #tpu.memory_space<vmem>>, %arg8: memref<8x10xf32, #tpu.memory_space<vmem>>) attributes {dimension_semantics = [#tpu.dimension_semantics<parallel>], iteration_bounds = array<i64: 1>, scalar_prefetch = 0 : i64, scratch_operands = 0 : i64, tpu.core_type = #tpu.core_type<tc>, window_params = [{transform_indices = @transform_0, window_bounds = array<i64: 8, 64>}, {pipeline_mode = #tpu.pipeline_mode<synchronous>, transform_indices = @transform_1, window_bounds = array<i64: 64, 128>}, {pipeline_mode = #tpu.pipeline_mode<synchronous>, transform_indices = @transform_2, window_bounds = array<i64: 1, 128>}, {pipeline_mode = #tpu.pipeline_mode<synchronous>, transform_indices = @transform_3, window_bounds = array<i64: 128, 128>}, {pipeline_mode = #tpu.pipeline_mode<synchronous>, transform_indices = @transform_4, window_bounds = array<i64: 1, 128>}, {pipeline_mode = #tpu.pipeline_mode<synchronous>, transform_indices = @transform_5, window_bounds = array<i64: 128, 10>}, {pipeline_mode = #tpu.pipeline_mode<synchronous>, transform_indices = @transform_6, window_bounds = array<i64: 1, 10>}, {transform_indices = @transform_7, window_bounds = array<i64: 8, 10>}]} {
    %c0 = arith.constant 0 : index
    %c0_0 = arith.constant 0 : index
    %0 = vector.load %arg1[%c0, %c0_0] : memref<8x64xf32, #tpu.memory_space<vmem>>, vector<8x64xf32>
    %1 = arith.truncf %0 : vector<8x64xf32> to vector<8x64xbf16>
    %c0_1 = arith.constant 0 : index
    %c0_2 = arith.constant 0 : index
    %2 = vector.load %arg2[%c0_1, %c0_2] : memref<64x128xbf16, #tpu.memory_space<vmem>>, vector<64x128xbf16>
    %cst = arith.constant dense<0.000000e+00> : vector<8x128xf32>
    %3 = tpu.matmul %1, %2, %cst {dimension_numbers = #tpu.dot_dimension_numbers<[1], [0], [0], [1], [0, 0, 1, 1], [], []>} : vector<8x64xbf16>, vector<64x128xbf16>, vector<8x128xf32> -> vector<8x128xf32>
    %c0_3 = arith.constant 0 : index
    %c0_4 = arith.constant 0 : index
    %4 = vector.load %arg3[%c0_3, %c0_4] : memref<1x128xf32, #tpu.memory_space<vmem>>, vector<1x128xf32>
    %5 = vector.broadcast %4 : vector<1x128xf32> to vector<8x128xf32>
    %6 = arith.addf %3, %5 : vector<8x128xf32>
    %cst_5 = arith.constant 0.000000e+00 : f32
    %7 = vector.broadcast %cst_5 : f32 to vector<8x128xf32>
    %8 = arith.maximumf %6, %7 : vector<8x128xf32>
    %9 = arith.truncf %8 : vector<8x128xf32> to vector<8x128xbf16>
    %c0_6 = arith.constant 0 : index
    %c0_7 = arith.constant 0 : index
    %10 = vector.load %arg4[%c0_6, %c0_7] : memref<128x128xbf16, #tpu.memory_space<vmem>>, vector<128x128xbf16>
    %cst_8 = arith.constant dense<0.000000e+00> : vector<8x128xf32>
    %11 = tpu.matmul %9, %10, %cst_8 {dimension_numbers = #tpu.dot_dimension_numbers<[1], [0], [0], [1], [0, 0, 1, 1], [], []>} : vector<8x128xbf16>, vector<128x128xbf16>, vector<8x128xf32> -> vector<8x128xf32>
    %c0_9 = arith.constant 0 : index
    %c0_10 = arith.constant 0 : index
    %12 = vector.load %arg5[%c0_9, %c0_10] : memref<1x128xf32, #tpu.memory_space<vmem>>, vector<1x128xf32>
    %13 = vector.broadcast %12 : vector<1x128xf32> to vector<8x128xf32>
    %14 = arith.addf %11, %13 : vector<8x128xf32>
    %cst_11 = arith.constant 0.000000e+00 : f32
    %15 = vector.broadcast %cst_11 : f32 to vector<8x128xf32>
    %16 = arith.maximumf %14, %15 : vector<8x128xf32>
    %17 = arith.truncf %16 : vector<8x128xf32> to vector<8x128xbf16>
    %c0_12 = arith.constant 0 : index
    %c0_13 = arith.constant 0 : index
    %18 = vector.load %arg6[%c0_12, %c0_13] : memref<128x10xbf16, #tpu.memory_space<vmem>>, vector<128x10xbf16>
    %cst_14 = arith.constant dense<0.000000e+00> : vector<8x10xf32>
    %19 = tpu.matmul %17, %18, %cst_14 {dimension_numbers = #tpu.dot_dimension_numbers<[1], [0], [0], [1], [0, 0, 1, 1], [], []>} : vector<8x128xbf16>, vector<128x10xbf16>, vector<8x10xf32> -> vector<8x10xf32>
    %c0_15 = arith.constant 0 : index
    %c0_16 = arith.constant 0 : index
    %20 = vector.load %arg7[%c0_15, %c0_16] : memref<1x10xf32, #tpu.memory_space<vmem>>, vector<1x10xf32>
    %21 = vector.broadcast %20 : vector<1x10xf32> to vector<8x10xf32>
    %22 = arith.addf %19, %21 : vector<8x10xf32>
    %c0_17 = arith.constant 0 : index
    %c0_18 = arith.constant 0 : index
    %23 = vector.load %arg8[%c0_17, %c0_18] : memref<8x10xf32, #tpu.memory_space<vmem>>, vector<8x10xf32>
    tpu.vector_store %arg8[%c0_17, %c0_18], %22 {strides = array<i32>} : memref<8x10xf32, #tpu.memory_space<vmem>>, vector<8x10xf32>,
    return
  }
  func.func @transform_0(%arg0: i32) -> (i32, i32) {
    %c0_i32 = arith.constant 0 : i32
    %c0_i32_0 = arith.constant 0 : i32
    return %arg0, %c0_i32 : i32, i32
  }
  func.func @transform_1(%arg0: i32) -> (i32, i32) {
    %c0_i32 = arith.constant 0 : i32
    %c0_i32_0 = arith.constant 0 : i32
    %c0_i32_1 = arith.constant 0 : i32
    return %c0_i32, %c0_i32_0 : i32, i32
  }
  func.func @transform_2(%arg0: i32) -> (i32, i32) {
    %c0_i32 = arith.constant 0 : i32
    %c0_i32_0 = arith.constant 0 : i32
    %c0_i32_1 = arith.constant 0 : i32
    return %c0_i32, %c0_i32_0 : i32, i32
  }
  func.func @transform_3(%arg0: i32) -> (i32, i32) {
    %c0_i32 = arith.constant 0 : i32
    %c0_i32_0 = arith.constant 0 : i32
    %c0_i32_1 = arith.constant 0 : i32
    return %c0_i32, %c0_i32_0 : i32, i32
  }
  func.func @transform_4(%arg0: i32) -> (i32, i32) {
    %c0_i32 = arith.constant 0 : i32
    %c0_i32_0 = arith.constant 0 : i32
    %c0_i32_1 = arith.constant 0 : i32
    return %c0_i32, %c0_i32_0 : i32, i32
  }
  func.func @transform_5(%arg0: i32) -> (i32, i32) {
    %c0_i32 = arith.constant 0 : i32
    %c0_i32_0 = arith.constant 0 : i32
    %c0_i32_1 = arith.constant 0 : i32
    return %c0_i32, %c0_i32_0 : i32, i32
  }
  func.func @transform_6(%arg0: i32) -> (i32, i32) {
    %c0_i32 = arith.constant 0 : i32
    %c0_i32_0 = arith.constant 0 : i32
    %c0_i32_1 = arith.constant 0 : i32
    return %c0_i32, %c0_i32_0 : i32, i32
  }
  func.func @transform_7(%arg0: i32) -> (i32, i32) {
    %c0_i32 = arith.constant 0 : i32
    %c0_i32_0 = arith.constant 0 : i32
    return %arg0, %c0_i32 : i32, i32
  }
}

</mosaic_0001>

<bundles_post_ra>
// kernel: nnv2_forward.1
= control target key start
LH: loop header
LB: loop body
LE: loop exit
PB: predicated region body
PF: predicated region fallthrough
CT: control target
= control target key end

     0   :  { %12 = vsyncpa [#allocation3], 0  ;;  %s699_s0 = inlined_call_operand.vmem [shape: f32[8,64], index: 0, kind: input, shape index: {}]   ;;  %s700_s1 = inlined_call_operand.hbm [shape: bf16[64,128], index: 1, kind: input, shape index: {}]   ;;  %s701_s2 = inlined_call_operand.vmem [shape: f32[1,128], index: 2, kind: input, shape index: {}]   ;;  %s702_s3 = inlined_call_operand.vmem [shape: bf16[128,128], index: 3, kind: input, shape index: {}]   ;;  %s703_s4 = inlined_call_operand.vmem [shape: f32[1,128], index: 4, kind: input, shape index: {}]   ;;  %s704_s5 = inlined_call_operand.vmem [shape: bf16[128,10], index: 5, kind: input, shape index: {}]   ;;  %s705_s6 = inlined_call_operand.vmem [shape: f32[1,10], index: 6, kind: input, shape index: {}]   ;;  %s706_s7 = inlined_call_operand.hbm [shape: f32[8,10], index: 7, kind: output, shape index: {}]  }
   0x1   :  { %13 = vsyncpa [#allocation4], 0  ;;  %s543_s24 = smov [#allocation2]   ;;  %s495_s28 = scalar_lea.hbm %s700_s1, 512 }
   0x2   :  { %s21_s25 = sshll.u32 %s543_s24, 4  ;;  %p496_p0 = scmp.ne.s32.totalorder %s700_s1, %s495_s28  ;;  %s22_s25 = int_to_ptr.vmem [resolvable:$true] %s21_s25 }
   0x3   :  { %p499_p1 = scmp.lt.u32.totalorder %s495_s28, %s700_s1 }
   0x5   :  { %p501_p2 = pnand %p499_p1, %p496_p0 }
   0x7   :  { %504 = shalt.err (!%p501_p2)
}
   0x8   :  { %s505_s10 = scalar_lea.vmem %s22_s25, 512  ;;  %p510_p4 = scmp.lt.s32.totalorder %s22_s25, %s22_s25 }
   0x9   :  { %p506_p3 = scmp.ne.s32.totalorder %s22_s25, %s505_s10  ;;  %p511_p5 = scmp.lt.s32.totalorder %s505_s10, %s505_s10 }
   0xb   :  { %p512_p6 = por %p511_p5, %p510_p4 }
   0xd   :  { %p513_p7 = pnand %p512_p6, %p506_p3 }
   0xf   :  { %516 = shalt.err (!%p513_p7)
}
  0x10   :  { %s544_s11 = smov 64   ;;  %s545_s12 = smov 4  }
  0x11   :  { %27 = dma.hbm_to_vmem [thread:$0]  %s700_s1, 512, %s22_s25, [#allocation3], %s544_s11, %s544_s11, %s545_s12  }
  0x12   :  { %539 = dma.done.wait [#allocation3], 512  }
  0x13   :  { %540 = vsyncadd [#allocation3], 4294966784  ;;  %v546_v0 = vmov 0.0   ;;  %vm547_vm0 = vmmov 0   ;;  %v475_v1 = vld [vmem:[#allocation2] sm:$0xff]   ;;  %v476_v2 = vld [vmem:[#allocation2 + $0x8] sm:$0xff]  }
  0x14   :  { %417 = vmatprep.subr.bf16.mxu0 %v546_v0  ;;  %425 = vmatprep.mubr.msk.bf16.mxu0 %vm547_vm0, %v546_v0  ;;  %v479_v3 = vld [vmem:[%s702_s3] sm:$0xff]   ;;  %v477_v4 = vld [vmem:[#allocation2 + $0x10] sm:$0xff]   ;;  %v480_v5 = vld [vmem:[%s702_s3 + $0x8] sm:$0xff]   ;;  %vm83_vm1 = vcmask 523264   ;;  %s548_s26 = smov [#allocation5]   ;;  %vm353_vm2 = vcmask 80896  }
  0x15   :  { %429 = vmatprep.subr.bf16.mxu1 %v546_v0  ;;  %445 = vmatprep.mubr.msk.bf16.mxu1 %vm547_vm0, %v546_v0  ;;  %v478_v6 = vld [vmem:[#allocation2 + $0x18] sm:$0xff]   ;;  %v42_v7 = vld [vmem:[%s699_s0] sm:$0xff]  ;;  %v481_v8 = vld [vmem:[%s702_s3 + $0x10] sm:$0xff]   ;;  %s361_s27 = sshll.u32 %s548_s26, 4  ;;  %s362_s27 = int_to_ptr.vmem [resolvable:$true] %s361_s27 }
  0x16   :  { %418 = vmatpush3.bf16.msra.mxu0 %v475_v1  ;;  %430 = vmatpush3.bf16.msra.mxu1 %v479_v3  ;;  %v43_v9 = vpack.c.bf16 %v42_v7, %v42_v7  ;;  %v482_v10 = vld [vmem:[%s702_s3 + $0x18] sm:$0xff]   ;;  %v483_v11 = vld [vmem:[%s702_s3 + $0x20] sm:$0xff]   ;;  %v484_v12 = vld [vmem:[%s702_s3 + $0x28] sm:$0xff]   ;;  %p522_p9 = scmp.lt.s32.totalorder %s362_s27, %s362_s27 }
  0x17   :  { %419 = vmatprep.subr.bf16.mxu0 %v546_v0  ;;  %431 = vmatprep.subr.bf16.mxu1 %v546_v0  ;;  %v485_v13 = vld [vmem:[%s702_s3 + $0x30] sm:$0xff]   ;;  %v486_v14 = vld [vmem:[%s702_s3 + $0x38] sm:$0xff]   ;;  %v487_v15 = vld [vmem:[%s704_s5] sm:$0xff]  }
  0x18   :  { %v488_v16 = vld [vmem:[%s704_s5 + $0x8] sm:$0xff]   ;;  %v489_v17 = vld [vmem:[%s704_s5 + $0x10] sm:$0xff]   ;;  %v490_v18 = vld [vmem:[%s704_s5 + $0x18] sm:$0xff]  }
  0x19   :  { %v491_v19 = vld [vmem:[%s704_s5 + $0x20] sm:$0xff]   ;;  %v492_v20 = vld [vmem:[%s704_s5 + $0x28] sm:$0xff]   ;;  %v493_v29 = vld [vmem:[%s704_s5 + $0x30] sm:$0xff]  }
  0x1a   :  { %420 = vmatpush3.bf16.msra.mxu0 %v476_v2  ;;  %432 = vmatpush3.bf16.msra.mxu1 %v480_v5  ;;  %v370_v21 = vld [vmem:[%s701_s2] ss:$0 sm:$0xff]  ;;  %v494_v30 = vld [vmem:[%s704_s5 + $0x38] sm:$0xff]  }
  0x1b   :  { %421 = vmatprep.subr.bf16.mxu0 %v546_v0  ;;  %433 = vmatprep.subr.bf16.mxu1 %v546_v0  ;;  %v376_v31 = vld [vmem:[%s703_s4] ss:$0 sm:$0xff]  ;;  %s517_s4 = scalar_lea.vmem %s362_s27, 128 }
  0x1c   :  { %v385_v39 = vld [vmem:[%s705_s6] ss:$0 sm:$0xff]  ;;  %p518_p8 = scmp.ne.s32.totalorder %s362_s27, %s517_s4  ;;  %p523_p10 = scmp.lt.s32.totalorder %s517_s4, %s517_s4 }
  0x1e   :  { %422 = vmatpush3.bf16.msra.mxu0 %v477_v4  ;;  %434 = vmatpush3.bf16.msra.mxu1 %v481_v8  ;;  %p524_p11 = por %p523_p10, %p522_p9 }
  0x1f   :  { %423 = vmatprep.subr.bf16.mxu0 %v546_v0  ;;  %435 = vmatprep.subr.bf16.mxu1 %v546_v0 }
  0x20   :  { %p525_p12 = pnand %p524_p11, %p518_p8 }
  0x22   :  { %424 = vmatpush3.bf16.msra.mxu0 %v478_v6  ;;  %436 = vmatpush3.bf16.msra.mxu1 %v482_v10 }
  0x23   :  { %449 = vmatprep.subr.bf16.mxu0 %v546_v0  ;;  %437 = vmatprep.subr.bf16.mxu1 %v546_v0 }
  0x25   :  { %426 = vmatmul.mubr.msk.bf16.vlgmr.msra.gmra.mrb[0].mxu0 %vm83_vm1, %v43_v9 }
  0x26   :  { %465 = vmatprep.mubr.msk.bf16.mxu0 %vm547_vm0, %v546_v0  ;;  %438 = vmatpush3.bf16.msra.mxu1 %v483_v11 }
  0x27   :  { %439 = vmatprep.subr.bf16.mxu1 %v546_v0  ;;  %450 = vmatpush3.bf16.msra.mxu0 %v487_v15 }
  0x28   :  { %451 = vmatprep.subr.bf16.mxu0 %v546_v0 }
  0x2a   :  { %440 = vmatpush3.bf16.msra.mxu1 %v484_v12 }
  0x2b   :  { %441 = vmatprep.subr.bf16.mxu1 %v546_v0  ;;  %452 = vmatpush3.bf16.msra.mxu0 %v488_v16 }
  0x2c   :  { %453 = vmatprep.subr.bf16.mxu0 %v546_v0 }
  0x2e   :  { %442 = vmatpush3.bf16.msra.mxu1 %v485_v13 }
  0x2f   :  { %443 = vmatprep.subr.bf16.mxu1 %v546_v0  ;;  %454 = vmatpush3.bf16.msra.mxu0 %v489_v17 }
  0x30   :  { %455 = vmatprep.subr.bf16.mxu0 %v546_v0 }
  0x32   :  { %444 = vmatpush3.bf16.msra.mxu1 %v486_v14 }
  0x33   :  { %456 = vmatpush3.bf16.msra.mxu0 %v490_v18 }
  0x34   :  { %457 = vmatprep.subr.bf16.mxu0 %v546_v0 }
  0x37   :  { %458 = vmatpush3.bf16.msra.mxu0 %v491_v19 }
  0x38   :  { %459 = vmatprep.subr.bf16.mxu0 %v546_v0 }
  0x3b   :  { %460 = vmatpush3.bf16.msra.mxu0 %v492_v20 }
  0x3c   :  { %461 = vmatprep.subr.bf16.mxu0 %v546_v0 }
  0x3f   :  { %462 = vmatpush3.bf16.msra.mxu0 %v493_v29 }
  0x40   :  { %463 = vmatprep.subr.bf16.mxu0 %v546_v0 }
  0x43   :  { %464 = vmatpush3.bf16.msra.mxu0 %v494_v30 }
  0xf8   :  { %v121_v22 = vpop.f32.mrb[0].mxu0 }
  0xf9   :  { %v122_v23 = vadd.f32 %v370_v21, %v121_v22  ;;  %v427_v24 = vpop.f32.mrb[1].mxu0 }
  0xfa   :  { %v124_v25 = vpop.f32.mrb[2].mxu0 }
  0xfb   :  { %v127_v26 = vmax.f32 %v122_v23, 0.0  ;;  %v428_v27 = vpop.f32.mrb[3].mxu0 }
  0xfd   :  { %v128_v28 = vpack.c.bf16 %v127_v26, %v127_v26 }
  0xff   :  { %446 = vmatmul.mubr.bf16.vlgmr.msra.gmra.mrb[0].mxu1 %v128_v28 }
 0x1d2   :  { %v234_v32 = vpop.f32.mrb[0].mxu1 }
 0x1d3   :  { %v235_v33 = vadd.f32 %v376_v31, %v234_v32  ;;  %v447_v34 = vpop.f32.mrb[1].mxu1 }
 0x1d4   :  { %v237_v35 = vpop.f32.mrb[2].mxu1 }
 0x1d5   :  { %v240_v36 = vmax.f32 %v235_v33, 0.0  ;;  %v448_v37 = vpop.f32.mrb[3].mxu1 }
 0x1d7   :  { %v241_v38 = vpack.c.bf16 %v240_v36, %v240_v36 }
 0x1d9   :  { %466 = vmatmul.mubr.bf16.vlgmr.msra.gmra.mrb[4].mxu0 %v241_v38 }
 0x2ac   :  { %v347_v40 = vpop.f32.mrb[4].mxu0 }
 0x2ad   :  { %v348_v41 = vadd.f32 %v385_v39, %v347_v40  ;;  %v467_v42 = vpop.f32.mrb[5].mxu0 }
 0x2ae   :  { %v350_v43 = vpop.f32.mrb[6].mxu0 }
 0x2af   :  { %v468_v44 = vpop.f32.mrb[7].mxu0  ;;  %354 = vst.msk [vmem:[#allocation5] sm:$0xff] %vm353_vm2, %v348_v41 }
 0x2b0   :  { %528 = shalt.err (!%p525_p12)
}
 0x2b1   :  { %s529_s6 = scalar_lea.hbm %s706_s7, 128 }
 0x2b2   :  { %p530_p13 = scmp.ne.s32.totalorder %s706_s7, %s529_s6  ;;  %p533_p0 = scmp.lt.u32.totalorder %s529_s6, %s706_s7 }
 0x2b4   :  { %p535_p1 = pnand %p533_p0, %p530_p13 }
 0x2b6   :  { %538 = shalt.err (!%p535_p1)
}
 0x2b7   :  { %364 = dma.vmem_to_hbm [thread:$0]  %s362_s27, 128, %s706_s7, [#allocation4]  }
 0x2b8   :  { %541 = dma.done.wait [#allocation4], 128  }
 0x2b9   :  { %542 = vsyncadd [#allocation4], 4294967168 }
 0x2ba   :  { %368 = vsyncpa [#allocation3], 1 }
 0x2bb   :  { %369 = vsyncpa [#allocation4], 1 }

</bundles_post_ra>
